<compile_context>
chip_gen: v6e
topology: v6e:2x2x1
jax: 0.10.0
libtpu: 0.0.40
codegen_flags: <defaults>
</compile_context>

<pallas_src>
import jax
import jax.numpy as jnp
from jax.experimental import pallas as pl
from jax.experimental.pallas import tpu as pltpu


def _scale_mul_kernel(s_ref, x_ref, o_ref):
    # s_ref: (block_c, 1) per-channel scale; x_ref/o_ref: (block_c, HW).
    # The size-1 lane axis of s_ref broadcasts across HW on the VPU.
    o_ref[...] = x_ref[...] * s_ref[...]


def _choose_block_rows(rows):
    """Pick a channel-block size that divides `rows` and is a multiple of 8.

    Preference (2, 6, 4, 8, 3):
      * even block counts first -> even split across v7x's 2 TensorCores when
        the axis is marked "parallel" (grid=(3,) runs at 2/3 efficiency there);
      * smallest count first -> fewest ~0.35 us per-grid-step overheads on
        single-TC chips (v5e/v6e) while still double-buffering DMA vs compute.
    Falls back to a general divisor search, then to one full-extent block
    (always legal, but loses DMA/compute overlap).
    """
    for nblk in (2, 6, 4, 8, 3):
        if rows % nblk == 0 and (rows // nblk) % 8 == 0:
            return rows // nblk
    for nblk in range(2, 17):
        if rows % nblk == 0 and (rows // nblk) % 8 == 0:
            return rows // nblk
    return rows


def channel_scale_mul(x308, x303):
    """(N, C, 1, 1) * (N, C, H, W) -> (N, C, H, W)   (x309 = x308 * x303)."""
    n, c, h, w = x303.shape
    assert x308.shape == (n, c, 1, 1)

    rows = n * c
    hw = h * w
    x2d = x303.reshape(rows, hw)   # metadata-only view of contiguous NCHW
    s2d = x308.reshape(rows, 1)

    block_rows = _choose_block_rows(rows)
    grid = (rows // block_rows,)

    x_bytes = jnp.dtype(x303.dtype).itemsize
    s_bytes = jnp.dtype(x308.dtype).itemsize
    cost = pl.CostEstimate(
        flops=rows * hw,
        transcendentals=0,
        bytes_accessed=2 * rows * hw * x_bytes + rows * s_bytes,
    )

    out = pl.pallas_call(
        _scale_mul_kernel,
        out_shape=jax.ShapeDtypeStruct((rows, hw), x303.dtype),
        grid_spec=pl.GridSpec(
            grid=grid,
            in_specs=[
                pl.BlockSpec((block_rows, 1), lambda i: (i, 0)),
                pl.BlockSpec((block_rows, hw), lambda i: (i, 0)),
            ],
            out_specs=pl.BlockSpec((block_rows, hw), lambda i: (i, 0)),
        ),
        compiler_params=pltpu.CompilerParams(
            dimension_semantics=("parallel",)
        ),
        cost_estimate=cost,
    )(s2d, x2d)

    return out.reshape(n, c, h, w)


if __name__ == "__main__":
    key = jax.random.PRNGKey(0)
    k1, k2 = jax.random.split(key)

    # Shapes match the PyTorch module: x303: (1, 1392, 14, 14), x308: (1, 1392, 1, 1)
    x303 = jax.random.normal(k1, (1, 1392, 14, 14), dtype=jnp.float32)
    x308 = jax.random.normal(k2, (1, 1392, 1, 1), dtype=jnp.float32)

    y = channel_scale_mul(x308, x303)
    y = jax.block_until_ready(y)

    ref = x308 * x303
    assert y.shape == ref.shape
    assert jnp.allclose(y, ref, atol=1e-6, rtol=1e-6)

    print("KERNEL_OK")
</pallas_src>

<mosaic_0001>
module attributes {stable_mosaic.version = 11 : i64} {
  func.func @_scale_mul_kernel(%arg0: i32, %arg1: memref<696x1xf32, #tpu.memory_space<vmem>>, %arg2: memref<696x196xf32, #tpu.memory_space<vmem>>, %arg3: memref<696x196xf32, #tpu.memory_space<vmem>>) attributes {dimension_semantics = [#tpu.dimension_semantics<parallel>], iteration_bounds = array<i64: 2>, scalar_prefetch = 0 : i64, scratch_operands = 0 : i64, tpu.core_type = #tpu.core_type<tc>, window_params = [{transform_indices = @transform_0, window_bounds = array<i64: 696, 1>}, {transform_indices = @transform_1, window_bounds = array<i64: 696, 196>}, {transform_indices = @transform_2, window_bounds = array<i64: 696, 196>}]} {
    %c0 = arith.constant 0 : index
    %c0_0 = arith.constant 0 : index
    %0 = vector.load %arg2[%c0, %c0_0] : memref<696x196xf32, #tpu.memory_space<vmem>>, vector<696x196xf32>
    %c0_1 = arith.constant 0 : index
    %c0_2 = arith.constant 0 : index
    %1 = vector.load %arg1[%c0_1, %c0_2] : memref<696x1xf32, #tpu.memory_space<vmem>>, vector<696x1xf32>
    %2 = vector.broadcast %1 : vector<696x1xf32> to vector<696x196xf32>
    %3 = arith.mulf %0, %2 : vector<696x196xf32>
    %c0_3 = arith.constant 0 : index
    %c0_4 = arith.constant 0 : index
    %4 = vector.load %arg3[%c0_3, %c0_4] : memref<696x196xf32, #tpu.memory_space<vmem>>, vector<696x196xf32>
    tpu.vector_store %arg3[%c0_3, %c0_4], %3 {strides = array<i32>} : memref<696x196xf32, #tpu.memory_space<vmem>>, vector<696x196xf32>,
    return
  }
  func.func @transform_0(%arg0: i32) -> (i32, i32) {
    %c0_i32 = arith.constant 0 : i32
    %c0_i32_0 = arith.constant 0 : i32
    return %arg0, %c0_i32 : i32, i32
  }
  func.func @transform_1(%arg0: i32) -> (i32, i32) {
    %c0_i32 = arith.constant 0 : i32
    %c0_i32_0 = arith.constant 0 : i32
    return %arg0, %c0_i32 : i32, i32
  }
  func.func @transform_2(%arg0: i32) -> (i32, i32) {
    %c0_i32 = arith.constant 0 : i32
    %c0_i32_0 = arith.constant 0 : i32
    return %arg0, %c0_i32 : i32, i32
  }
}

</mosaic_0001>

<bundles_post_ra>
// kernel: tpu_custom_call.1
= control target key start
LH: loop header
LB: loop body
LE: loop exit
PB: predicated region body
PF: predicated region fallthrough
CT: control target
= control target key end

     0   :  { %s1338_s9 = smov 0   ;;  %s1890_s0 = inlined_call_operand.vmem [shape: f32[1392,1], index: 0, kind: input, shape index: {}]   ;;  %s1891_s1 = inlined_call_operand.vmem [shape: f32[1392,196], index: 1, kind: input, shape index: {}]   ;;  %s1892_s2 = inlined_call_operand.vmem [shape: f32[1392,196], index: 2, kind: output, shape index: {}]  }
   0x1 LB: > { %s1289_s10 = sadd.s32 4294967295, %s1320_s9   ;;  %p1293_p0 = scmp.ge.s32.totalorder %s1320_s9, 1  ;;  %s1320_s9 = sphi %s1338_s9, %s12_s9  }
   0x2   : > { %p125_p1 = scmp.lt.s32.totalorder %s1320_s9, 3 }
   0x4   : > { %p126_p2 = pnand %p1293_p0, %p125_p1 }
   0x5   : > { %s154_s11 = smul.u32 (!%p126_p2), 87, %s1289_s10 }
   0x6   : > { %129 = sbr.rel (%p126_p2) target bundleno = 315 (0x13b), region = 28 }
   0x7   : > { %p155_p3 = scmp.lt.s32.totalorder (!%p126_p2), %s154_s11, 173 }
   0xb   : > { %v1322_v0 = vmov 0   ;;  %s1894_s11 = smov (!%p155_p3, %s154_s11), 173  ;;  %vm1045_vm0 = vcmask 556032  }
   0xc   : > { %1313 = vset.pattern.permute.xlu1 %v1322_v0  ;;  %1312 = vset.pattern.permute.xlu0 %v1322_v0  ;;  %s1294_s12 = sshll.u32 %s1894_s11, 3  ;;  %s1301_s16 = sshll.u32 %s1894_s11, 4 }
   0xd   : > { %s1352_s15 = scalar_lea.vmem %s1890_s0, %s1294_s12  ;;  %s1420_s19 = scalar_lea.vmem %s1891_s1, %s1301_s16 }
   0xe   : > { %v350_v1 = vld [vmem:[%s1352_s15 + $0x10] sm:$0xff]  ;;  %v348_v2 = vld [vmem:[%s1352_s15] sm:$0xff]  ;;  %v351_v3 = vld [vmem:[%s1352_s15 + $0x18] sm:$0xff]  ;;  %s1431_s22 = scalar_lea.vmem %s1892_s2, %s1301_s16 }
   0xf   : > { %447 = vperm.xlu1 %1313, %v350_v1   ;;  %437 = vperm.xlu0 %1312, %v348_v2   ;;  %v349_v4 = vld [vmem:[%s1352_s15 + $0x8] sm:$0xff]  ;;  %v352_v6 = vld [vmem:[%s1352_s15 + $0x20] sm:$0xff]  ;;  %v355_v7 = vld [vmem:[%s1352_s15 + $0x38] sm:$0xff] }
  0x10   : > { %v353_v5 = vld [vmem:[%s1352_s15 + $0x28] sm:$0xff]  ;;  %v354_v8 = vld [vmem:[%s1352_s15 + $0x30] sm:$0xff]  ;;  %v356_v10 = vld [vmem:[%s1352_s15 + $0x40] sm:$0xff] }
  0x11   : > { %v357_v9 = vld [vmem:[%s1352_s15 + $0x48] sm:$0xff]  ;;  %v359_v11 = vld [vmem:[%s1352_s15 + $0x58] sm:$0xff]  ;;  %v358_v12 = vld [vmem:[%s1352_s15 + $0x50] sm:$0xff] }
  0x12   : > { %v361_v13 = vld [vmem:[%s1352_s15 + $0x68] sm:$0xff]  ;;  %v360_v14 = vld [vmem:[%s1352_s15 + $0x60] sm:$0xff]  ;;  %v363_v15 = vld [vmem:[%s1352_s15 + $0x78] sm:$0xff] }
  0x13   : > { %452 = vperm.xlu1 %1313, %v351_v3   ;;  %442 = vperm.xlu0 %1312, %v349_v4   ;;  %v362_v16 = vld [vmem:[%s1352_s15 + $0x70] sm:$0xff]  ;;  %v365_v17 = vld [vmem:[%s1352_s15 + $0x88] sm:$0xff]  ;;  %v364_v18 = vld [vmem:[%s1352_s15 + $0x80] sm:$0xff] }
  0x14   : > { %v367_v19 = vld [vmem:[%s1352_s15 + $0x98] sm:$0xff]  ;;  %v366_v20 = vld [vmem:[%s1352_s15 + $0x90] sm:$0xff]  ;;  %v369_v21 = vld [vmem:[%s1352_s15 + $0xa8] sm:$0xff] }
  0x15   : > { %v368_v22 = vld [vmem:[%s1352_s15 + $0xa0] sm:$0xff]  ;;  %v371_v23 = vld [vmem:[%s1352_s15 + $0xb8] sm:$0xff]  ;;  %v370_v24 = vld [vmem:[%s1352_s15 + $0xb0] sm:$0xff] }
  0x16   : > { %v373_v25 = vld [vmem:[%s1352_s15 + $0xc8] sm:$0xff]  ;;  %v372_v26 = vld [vmem:[%s1352_s15 + $0xc0] sm:$0xff]  ;;  %v375_v27 = vld [vmem:[%s1352_s15 + $0xd8] sm:$0xff] }
  0x17   : > { %462 = vperm.xlu1 %1313, %v353_v5   ;;  %457 = vperm.xlu0 %1312, %v352_v6   ;;  %v374_v28 = vld [vmem:[%s1352_s15 + $0xd0] sm:$0xff]  ;;  %v377_v29 = vld [vmem:[%s1352_s15 + $0xe8] sm:$0xff]  ;;  %v376_v30 = vld [vmem:[%s1352_s15 + $0xe0] sm:$0xff] }
  0x18   : > { %v379_v31 = vld [vmem:[%s1352_s15 + $0xf8] sm:$0xff]  ;;  %v378_v32 = vld [vmem:[%s1352_s15 + $0xf0] sm:$0xff]  ;;  %v381_v33 = vld [vmem:[%s1352_s15 + $0x108] sm:$0xff] }
  0x19   : > { %v380_v34 = vld [vmem:[%s1352_s15 + $0x100] sm:$0xff]  ;;  %v383_v35 = vld [vmem:[%s1352_s15 + $0x118] sm:$0xff]  ;;  %v382_v36 = vld [vmem:[%s1352_s15 + $0x110] sm:$0xff] }
  0x1a   : > { %v385_v37 = vld [vmem:[%s1352_s15 + $0x128] sm:$0xff]  ;;  %v384_v38 = vld [vmem:[%s1352_s15 + $0x120] sm:$0xff]  ;;  %v387_v39 = vld [vmem:[%s1352_s15 + $0x138] sm:$0xff] }
  0x1b   : > { %472 = vperm.xlu1 %1313, %v355_v7   ;;  %467 = vperm.xlu0 %1312, %v354_v8   ;;  %v386_v40 = vld [vmem:[%s1352_s15 + $0x130] sm:$0xff]  ;;  %v389_v41 = vld [vmem:[%s1352_s15 + $0x148] sm:$0xff]  ;;  %v388_v42 = vld [vmem:[%s1352_s15 + $0x140] sm:$0xff] }
  0x1c   : > { %v391_v43 = vld [vmem:[%s1352_s15 + $0x158] sm:$0xff]  ;;  %v390_v44 = vld [vmem:[%s1352_s15 + $0x150] sm:$0xff]  ;;  %v393_v45 = vld [vmem:[%s1352_s15 + $0x168] sm:$0xff] }
  0x1d   : > { %v392_v46 = vld [vmem:[%s1352_s15 + $0x160] sm:$0xff]  ;;  %v395_v47 = vld [vmem:[%s1352_s15 + $0x178] sm:$0xff]  ;;  %v394_v48 = vld [vmem:[%s1352_s15 + $0x170] sm:$0xff] }
  0x1e   : > { %v397_v49 = vld [vmem:[%s1352_s15 + $0x188] sm:$0xff]  ;;  %v396_v50 = vld [vmem:[%s1352_s15 + $0x180] sm:$0xff]  ;;  %v399_v51 = vld [vmem:[%s1352_s15 + $0x198] sm:$0xff] }
  0x1f   : > { %482 = vperm.xlu1 %1313, %v357_v9   ;;  %477 = vperm.xlu0 %1312, %v356_v10   ;;  %v398_v52 = vld [vmem:[%s1352_s15 + $0x190] sm:$0xff]  ;;  %v401_v53 = vld [vmem:[%s1352_s15 + $0x1a8] sm:$0xff]  ;;  %v400_v54 = vld [vmem:[%s1352_s15 + $0x1a0] sm:$0xff] }
  0x20   : > { %v403_v55 = vld [vmem:[%s1352_s15 + $0x1b8] sm:$0xff]  ;;  %v402_v56 = vld [vmem:[%s1352_s15 + $0x1b0] sm:$0xff]  ;;  %v405_v57 = vld [vmem:[%s1352_s15 + $0x1c8] sm:$0xff] }
  0x21   : > { %v404_v58 = vld [vmem:[%s1352_s15 + $0x1c0] sm:$0xff]  ;;  %v407_v59 = vld [vmem:[%s1352_s15 + $0x1d8] sm:$0xff]  ;;  %v406_v60 = vld [vmem:[%s1352_s15 + $0x1d0] sm:$0xff] }
  0x22   : > { %v409_v61 = vld [vmem:[%s1352_s15 + $0x1e8] sm:$0xff]  ;;  %v408_v62 = vld [vmem:[%s1352_s15 + $0x1e0] sm:$0xff]  ;;  %v411_v3 = vld [vmem:[%s1352_s15 + $0x1f8] sm:$0xff] }
  0x23   : > { %492 = vperm.xlu1 %1313, %v359_v11   ;;  %487 = vperm.xlu0 %1312, %v358_v12   ;;  %v178_v63 = vld [vmem:[%s1420_s19 + $0x20] sm:$0xff]  ;;  %v179_v0 = vld [vmem:[%s1420_s19 + $0x28] sm:$0xff]  ;;  %v410_v4 = vld [vmem:[%s1352_s15 + $0x1f0] sm:$0xff] }
  0x24   : > { %v174_v1 = vld [vmem:[%s1420_s19] sm:$0xff]  ;;  %v175_v2 = vld [vmem:[%s1420_s19 + $0x8] sm:$0xff]  ;;  %v180_v11 = vld [vmem:[%s1420_s19 + $0x30] sm:$0xff] }
  0x25   : > { %v181_v12 = vld [vmem:[%s1420_s19 + $0x38] sm:$0xff] }
  0x27   : > { %502 = vperm.xlu1 %1313, %v361_v13   ;;  %497 = vperm.xlu0 %1312, %v360_v14   ;;  %v176_v13 = vld [vmem:[%s1420_s19 + $0x10] sm:$0xff]  ;;  %v177_v14 = vld [vmem:[%s1420_s19 + $0x18] sm:$0xff] }
  0x2b   : > { %512 = vperm.xlu1 %1313, %v363_v15   ;;  %507 = vperm.xlu0 %1312, %v362_v16   ;;  %v413_v15 = vld [vmem:[%s1352_s15 + $0x208] sm:$0xff]  ;;  %v412_v16 = vld [vmem:[%s1352_s15 + $0x200] sm:$0xff] }
  0x2f   : > { %522 = vperm.xlu1 %1313, %v365_v17   ;;  %517 = vperm.xlu0 %1312, %v364_v18  }
  0x33   : > { %532 = vperm.xlu1 %1313, %v367_v19   ;;  %527 = vperm.xlu0 %1312, %v366_v20  }
  0x37   : > { %542 = vperm.xlu1 %1313, %v369_v21   ;;  %537 = vperm.xlu0 %1312, %v368_v22  }
  0x3b   : > { %552 = vperm.xlu1 %1313, %v371_v23   ;;  %547 = vperm.xlu0 %1312, %v370_v24   ;;  %v184_v23 = vld [vmem:[%s1420_s19 + $0x50] sm:$0xff]  ;;  %v185_v24 = vld [vmem:[%s1420_s19 + $0x58] sm:$0xff] }
  0x3f   : > { %562 = vperm.xlu1 %1313, %v373_v25   ;;  %557 = vperm.xlu0 %1312, %v372_v26   ;;  %v182_v25 = vld [vmem:[%s1420_s19 + $0x40] sm:$0xff]  ;;  %v183_v26 = vld [vmem:[%s1420_s19 + $0x48] sm:$0xff] }
  0x43   : > { %572 = vperm.xlu1 %1313, %v375_v27   ;;  %567 = vperm.xlu0 %1312, %v374_v28   ;;  %v415_v27 = vld [vmem:[%s1352_s15 + $0x218] sm:$0xff]  ;;  %v414_v28 = vld [vmem:[%s1352_s15 + $0x210] sm:$0xff] }
  0x47   : > { %582 = vperm.xlu1 %1313, %v377_v29   ;;  %577 = vperm.xlu0 %1312, %v376_v30  }
  0x4b   : > { %592 = vperm.xlu1 %1313, %v379_v31   ;;  %587 = vperm.xlu0 %1312, %v378_v32  }
  0x4f   : > { %602 = vperm.xlu1 %1313, %v381_v33   ;;  %597 = vperm.xlu0 %1312, %v380_v34  }
  0x53   : > { %612 = vperm.xlu1 %1313, %v383_v35   ;;  %607 = vperm.xlu0 %1312, %v382_v36   ;;  %v188_v35 = vld [vmem:[%s1420_s19 + $0x70] sm:$0xff]  ;;  %v189_v36 = vld [vmem:[%s1420_s19 + $0x78] sm:$0xff] }
  0x57   : > { %622 = vperm.xlu1 %1313, %v385_v37   ;;  %617 = vperm.xlu0 %1312, %v384_v38   ;;  %v186_v37 = vld [vmem:[%s1420_s19 + $0x60] sm:$0xff]  ;;  %v187_v38 = vld [vmem:[%s1420_s19 + $0x68] sm:$0xff] }
  0x5b   : > { %632 = vperm.xlu1 %1313, %v387_v39   ;;  %627 = vperm.xlu0 %1312, %v386_v40   ;;  %v417_v39 = vld [vmem:[%s1352_s15 + $0x228] sm:$0xff]  ;;  %v416_v40 = vld [vmem:[%s1352_s15 + $0x220] sm:$0xff] }
  0x5f   : > { %642 = vperm.xlu1 %1313, %v389_v41   ;;  %637 = vperm.xlu0 %1312, %v388_v42  }
  0x63   : > { %652 = vperm.xlu1 %1313, %v391_v43   ;;  %647 = vperm.xlu0 %1312, %v390_v44  }
  0x67   : > { %662 = vperm.xlu1 %1313, %v393_v45   ;;  %657 = vperm.xlu0 %1312, %v392_v46  }
  0x6b   : > { %672 = vperm.xlu1 %1313, %v395_v47   ;;  %667 = vperm.xlu0 %1312, %v394_v48   ;;  %v192_v47 = vld [vmem:[%s1420_s19 + $0x90] sm:$0xff]  ;;  %v193_v48 = vld [vmem:[%s1420_s19 + $0x98] sm:$0xff] }
  0x6f   : > { %682 = vperm.xlu1 %1313, %v397_v49   ;;  %677 = vperm.xlu0 %1312, %v396_v50   ;;  %v190_v49 = vld [vmem:[%s1420_s19 + $0x80] sm:$0xff]  ;;  %v191_v50 = vld [vmem:[%s1420_s19 + $0x88] sm:$0xff] }
  0x73   : > { %692 = vperm.xlu1 %1313, %v399_v51   ;;  %687 = vperm.xlu0 %1312, %v398_v52   ;;  %v419_v51 = vld [vmem:[%s1352_s15 + $0x238] sm:$0xff]  ;;  %v418_v52 = vld [vmem:[%s1352_s15 + $0x230] sm:$0xff] }
  0x77   : > { %702 = vperm.xlu1 %1313, %v401_v53   ;;  %697 = vperm.xlu0 %1312, %v400_v54  }
  0x7b   : > { %712 = vperm.xlu1 %1313, %v403_v55   ;;  %707 = vperm.xlu0 %1312, %v402_v56  }
  0x7f   : > { %722 = vperm.xlu1 %1313, %v405_v57   ;;  %717 = vperm.xlu0 %1312, %v404_v58  }
  0x83   : > { %732 = vperm.xlu1 %1313, %v407_v59   ;;  %727 = vperm.xlu0 %1312, %v406_v60   ;;  %v196_v59 = vld [vmem:[%s1420_s19 + $0xb0] sm:$0xff]  ;;  %v197_v60 = vld [vmem:[%s1420_s19 + $0xb8] sm:$0xff] }
  0x87   : > { %742 = vperm.xlu1 %1313, %v409_v61   ;;  %737 = vperm.xlu0 %1312, %v408_v62   ;;  %v194_v61 = vld [vmem:[%s1420_s19 + $0xa0] sm:$0xff]  ;;  %v195_v62 = vld [vmem:[%s1420_s19 + $0xa8] sm:$0xff] }
  0x8a   : > { %v448_v5 = vpop.permute.xlu1 %447  ;;  %v438_v6 = vpop.permute.xlu0 %437 }
  0x8b   : > { %v874_v7 = vmul.f32 %v448_v5, %v178_v63  ;;  %v875_v8 = vmul.f32 %v448_v5, %v179_v0  ;;  %v870_v9 = vmul.f32 %v438_v6, %v174_v1  ;;  %v871_v10 = vmul.f32 %v438_v6, %v175_v2  ;;  %752 = vperm.xlu1 %1313, %v411_v3   ;;  %v421_v63 = vld [vmem:[%s1352_s15 + $0x248] sm:$0xff]  ;;  %v420_v0 = vld [vmem:[%s1352_s15 + $0x240] sm:$0xff] }
  0x8c   : > { %747 = vperm.xlu0 %1312, %v410_v4  }
  0x8d   : > { %1049 = vst [vmem:[%s1431_s22 + $0x20] sm:$0xff] %v874_v7  ;;  %1050 = vst.msk [vmem:[%s1431_s22 + $0x28] sm:$0xff] %vm1045_vm0, %v875_v8  ;;  %v200_v7 = vld [vmem:[%s1420_s19 + $0xd0] sm:$0xff]  ;;  %v201_v8 = vld [vmem:[%s1420_s19 + $0xd8] sm:$0xff] }
  0x8e   : > { %1044 = vst [vmem:[%s1431_s22] sm:$0xff] %v870_v9  ;;  %1046 = vst.msk [vmem:[%s1431_s22 + $0x8] sm:$0xff] %vm1045_vm0, %v871_v10  ;;  %v453_v17 = vpop.permute.xlu1 %452  ;;  %v443_v18 = vpop.permute.xlu0 %442  ;;  %v198_v9 = vld [vmem:[%s1420_s19 + $0xc0] sm:$0xff]  ;;  %v199_v10 = vld [vmem:[%s1420_s19 + $0xc8] sm:$0xff] }
  0x8f   : > { %v876_v19 = vmul.f32 %v453_v17, %v180_v11  ;;  %v877_v20 = vmul.f32 %v453_v17, %v181_v12  ;;  %v872_v21 = vmul.f32 %v443_v18, %v176_v13  ;;  %v873_v22 = vmul.f32 %v443_v18, %v177_v14  ;;  %762 = vperm.xlu1 %1313, %v413_v15   ;;  %v423_v11 = vld [vmem:[%s1352_s15 + $0x258] sm:$0xff]  ;;  %v422_v12 = vld [vmem:[%s1352_s15 + $0x250] sm:$0xff] }
  0x90   : > { %757 = vperm.xlu0 %1312, %v412_v16  }
  0x91   : > { %1051 = vst [vmem:[%s1431_s22 + $0x30] sm:$0xff] %v876_v19  ;;  %1052 = vst.msk [vmem:[%s1431_s22 + $0x38] sm:$0xff] %vm1045_vm0, %v877_v20  ;;  %v204_v19 = vld [vmem:[%s1420_s19 + $0xf0] sm:$0xff]  ;;  %v205_v20 = vld [vmem:[%s1420_s19 + $0xf8] sm:$0xff] }
  0x92   : > { %1047 = vst [vmem:[%s1431_s22 + $0x10] sm:$0xff] %v872_v21  ;;  %1048 = vst.msk [vmem:[%s1431_s22 + $0x18] sm:$0xff] %vm1045_vm0, %v873_v22  ;;  %v463_v29 = vpop.permute.xlu1 %462  ;;  %v458_v30 = vpop.permute.xlu0 %457  ;;  %v202_v21 = vld [vmem:[%s1420_s19 + $0xe0] sm:$0xff]  ;;  %v203_v22 = vld [vmem:[%s1420_s19 + $0xe8] sm:$0xff] }
  0x93   : > { %v880_v31 = vmul.f32 %v463_v29, %v184_v23  ;;  %v881_v32 = vmul.f32 %v463_v29, %v185_v24  ;;  %v878_v33 = vmul.f32 %v458_v30, %v182_v25  ;;  %v879_v34 = vmul.f32 %v458_v30, %v183_v26  ;;  %772 = vperm.xlu1 %1313, %v415_v27   ;;  %v425_v23 = vld [vmem:[%s1352_s15 + $0x268] sm:$0xff]  ;;  %v424_v24 = vld [vmem:[%s1352_s15 + $0x260] sm:$0xff] }
  0x94   : > { %767 = vperm.xlu0 %1312, %v414_v28  }
  0x95   : > { %1055 = vst [vmem:[%s1431_s22 + $0x50] sm:$0xff] %v880_v31  ;;  %1056 = vst.msk [vmem:[%s1431_s22 + $0x58] sm:$0xff] %vm1045_vm0, %v881_v32  ;;  %v208_v31 = vld [vmem:[%s1420_s19 + $0x110] sm:$0xff]  ;;  %v209_v32 = vld [vmem:[%s1420_s19 + $0x118] sm:$0xff] }
  0x96   : > { %1053 = vst [vmem:[%s1431_s22 + $0x40] sm:$0xff] %v878_v33  ;;  %1054 = vst.msk [vmem:[%s1431_s22 + $0x48] sm:$0xff] %vm1045_vm0, %v879_v34  ;;  %v473_v41 = vpop.permute.xlu1 %472  ;;  %v468_v42 = vpop.permute.xlu0 %467  ;;  %v206_v33 = vld [vmem:[%s1420_s19 + $0x100] sm:$0xff]  ;;  %v207_v34 = vld [vmem:[%s1420_s19 + $0x108] sm:$0xff] }
  0x97   : > { %v884_v43 = vmul.f32 %v473_v41, %v188_v35  ;;  %v885_v44 = vmul.f32 %v473_v41, %v189_v36  ;;  %v882_v45 = vmul.f32 %v468_v42, %v186_v37  ;;  %v883_v46 = vmul.f32 %v468_v42, %v187_v38  ;;  %782 = vperm.xlu1 %1313, %v417_v39   ;;  %v427_v35 = vld [vmem:[%s1352_s15 + $0x278] sm:$0xff]  ;;  %v426_v36 = vld [vmem:[%s1352_s15 + $0x270] sm:$0xff] }
  0x98   : > { %777 = vperm.xlu0 %1312, %v416_v40  }
  0x99   : > { %1059 = vst [vmem:[%s1431_s22 + $0x70] sm:$0xff] %v884_v43  ;;  %1060 = vst.msk [vmem:[%s1431_s22 + $0x78] sm:$0xff] %vm1045_vm0, %v885_v44  ;;  %v212_v43 = vld [vmem:[%s1420_s19 + $0x130] sm:$0xff]  ;;  %v213_v44 = vld [vmem:[%s1420_s19 + $0x138] sm:$0xff] }
  0x9a   : > { %1057 = vst [vmem:[%s1431_s22 + $0x60] sm:$0xff] %v882_v45  ;;  %1058 = vst.msk [vmem:[%s1431_s22 + $0x68] sm:$0xff] %vm1045_vm0, %v883_v46  ;;  %v483_v53 = vpop.permute.xlu1 %482  ;;  %v478_v54 = vpop.permute.xlu0 %477  ;;  %v210_v45 = vld [vmem:[%s1420_s19 + $0x120] sm:$0xff]  ;;  %v211_v46 = vld [vmem:[%s1420_s19 + $0x128] sm:$0xff] }
  0x9b   : > { %v888_v55 = vmul.f32 %v483_v53, %v192_v47  ;;  %v889_v56 = vmul.f32 %v483_v53, %v193_v48  ;;  %v886_v57 = vmul.f32 %v478_v54, %v190_v49  ;;  %v887_v58 = vmul.f32 %v478_v54, %v191_v50  ;;  %792 = vperm.xlu1 %1313, %v419_v51   ;;  %v429_v47 = vld [vmem:[%s1352_s15 + $0x288] sm:$0xff]  ;;  %v428_v48 = vld [vmem:[%s1352_s15 + $0x280] sm:$0xff] }
  0x9c   : > { %787 = vperm.xlu0 %1312, %v418_v52  }
  0x9d   : > { %1063 = vst [vmem:[%s1431_s22 + $0x90] sm:$0xff] %v888_v55  ;;  %1064 = vst.msk [vmem:[%s1431_s22 + $0x98] sm:$0xff] %vm1045_vm0, %v889_v56  ;;  %v216_v55 = vld [vmem:[%s1420_s19 + $0x150] sm:$0xff]  ;;  %v217_v56 = vld [vmem:[%s1420_s19 + $0x158] sm:$0xff] }
  0x9e   : > { %1061 = vst [vmem:[%s1431_s22 + $0x80] sm:$0xff] %v886_v57  ;;  %1062 = vst.msk [vmem:[%s1431_s22 + $0x88] sm:$0xff] %vm1045_vm0, %v887_v58  ;;  %v493_v1 = vpop.permute.xlu1 %492  ;;  %v488_v2 = vpop.permute.xlu0 %487  ;;  %v214_v57 = vld [vmem:[%s1420_s19 + $0x140] sm:$0xff]  ;;  %v215_v58 = vld [vmem:[%s1420_s19 + $0x148] sm:$0xff] }
  0x9f   : > { %v892_v3 = vmul.f32 %v493_v1, %v196_v59  ;;  %v893_v4 = vmul.f32 %v493_v1, %v197_v60  ;;  %v890_v5 = vmul.f32 %v488_v2, %v194_v61  ;;  %v891_v6 = vmul.f32 %v488_v2, %v195_v62  ;;  %802 = vperm.xlu1 %1313, %v421_v63   ;;  %v431_v59 = vld [vmem:[%s1352_s15 + $0x298] sm:$0xff]  ;;  %v430_v60 = vld [vmem:[%s1352_s15 + $0x290] sm:$0xff] }
  0xa0   : > { %797 = vperm.xlu0 %1312, %v420_v0  }
  0xa1   : > { %1067 = vst [vmem:[%s1431_s22 + $0xb0] sm:$0xff] %v892_v3  ;;  %1068 = vst.msk [vmem:[%s1431_s22 + $0xb8] sm:$0xff] %vm1045_vm0, %v893_v4  ;;  %v220_v3 = vld [vmem:[%s1420_s19 + $0x170] sm:$0xff]  ;;  %v221_v4 = vld [vmem:[%s1420_s19 + $0x178] sm:$0xff] }
  0xa2   : > { %1065 = vst [vmem:[%s1431_s22 + $0xa0] sm:$0xff] %v890_v5  ;;  %1066 = vst.msk [vmem:[%s1431_s22 + $0xa8] sm:$0xff] %vm1045_vm0, %v891_v6  ;;  %v503_v13 = vpop.permute.xlu1 %502  ;;  %v498_v14 = vpop.permute.xlu0 %497  ;;  %v218_v5 = vld [vmem:[%s1420_s19 + $0x160] sm:$0xff]  ;;  %v219_v6 = vld [vmem:[%s1420_s19 + $0x168] sm:$0xff] }
  0xa3   : > { %v896_v15 = vmul.f32 %v503_v13, %v200_v7  ;;  %v897_v16 = vmul.f32 %v503_v13, %v201_v8  ;;  %v894_v17 = vmul.f32 %v498_v14, %v198_v9  ;;  %v895_v18 = vmul.f32 %v498_v14, %v199_v10  ;;  %812 = vperm.xlu1 %1313, %v423_v11   ;;  %v433_v7 = vld [vmem:[%s1352_s15 + $0x2a8] sm:$0xff]  ;;  %v432_v8 = vld [vmem:[%s1352_s15 + $0x2a0] sm:$0xff] }
  0xa4   : > { %807 = vperm.xlu0 %1312, %v422_v12  }
  0xa5   : > { %1071 = vst [vmem:[%s1431_s22 + $0xd0] sm:$0xff] %v896_v15  ;;  %1072 = vst.msk [vmem:[%s1431_s22 + $0xd8] sm:$0xff] %vm1045_vm0, %v897_v16  ;;  %v224_v15 = vld [vmem:[%s1420_s19 + $0x190] sm:$0xff]  ;;  %v225_v16 = vld [vmem:[%s1420_s19 + $0x198] sm:$0xff] }
  0xa6   : > { %1069 = vst [vmem:[%s1431_s22 + $0xc0] sm:$0xff] %v894_v17  ;;  %1070 = vst.msk [vmem:[%s1431_s22 + $0xc8] sm:$0xff] %vm1045_vm0, %v895_v18  ;;  %v513_v25 = vpop.permute.xlu1 %512  ;;  %v508_v26 = vpop.permute.xlu0 %507  ;;  %v222_v17 = vld [vmem:[%s1420_s19 + $0x180] sm:$0xff]  ;;  %v223_v18 = vld [vmem:[%s1420_s19 + $0x188] sm:$0xff] }
  0xa7   : > { %v900_v27 = vmul.f32 %v513_v25, %v204_v19  ;;  %v901_v28 = vmul.f32 %v513_v25, %v205_v20  ;;  %v898_v29 = vmul.f32 %v508_v26, %v202_v21  ;;  %v899_v30 = vmul.f32 %v508_v26, %v203_v22  ;;  %822 = vperm.xlu1 %1313, %v425_v23   ;;  %v434_v19 = vld [vmem:[%s1352_s15 + $0x2b0] sm:$0xff] }
  0xa8   : > { %817 = vperm.xlu0 %1312, %v424_v24   ;;  %v228_v26 = vld [vmem:[%s1420_s19 + $0x1b0] sm:$0xff] }
  0xa9   : > { %1075 = vst [vmem:[%s1431_s22 + $0xf0] sm:$0xff] %v900_v27  ;;  %1076 = vst.msk [vmem:[%s1431_s22 + $0xf8] sm:$0xff] %vm1045_vm0, %v901_v28  ;;  %v229_v27 = vld [vmem:[%s1420_s19 + $0x1b8] sm:$0xff]  ;;  %v226_v28 = vld [vmem:[%s1420_s19 + $0x1a0] sm:$0xff] }
  0xaa   : > { %1073 = vst [vmem:[%s1431_s22 + $0xe0] sm:$0xff] %v898_v29  ;;  %1074 = vst.msk [vmem:[%s1431_s22 + $0xe8] sm:$0xff] %vm1045_vm0, %v899_v30  ;;  %v523_v37 = vpop.permute.xlu1 %522  ;;  %v518_v38 = vpop.permute.xlu0 %517  ;;  %v227_v29 = vld [vmem:[%s1420_s19 + $0x1a8] sm:$0xff] }
  0xab   : > { %v904_v39 = vmul.f32 %v523_v37, %v208_v31  ;;  %v905_v40 = vmul.f32 %v523_v37, %v209_v32  ;;  %v902_v41 = vmul.f32 %v518_v38, %v206_v33  ;;  %v903_v42 = vmul.f32 %v518_v38, %v207_v34  ;;  %832 = vperm.xlu1 %1313, %v427_v35   ;;  %v233_v37 = vld [vmem:[%s1420_s19 + $0x1d8] sm:$0xff]  ;;  %v230_v38 = vld [vmem:[%s1420_s19 + $0x1c0] sm:$0xff] }
  0xac   : > { %827 = vperm.xlu0 %1312, %v426_v36   ;;  %v232_v36 = vld [vmem:[%s1420_s19 + $0x1d0] sm:$0xff] }
  0xad   : > { %1079 = vst [vmem:[%s1431_s22 + $0x110] sm:$0xff] %v904_v39  ;;  %1080 = vst.msk [vmem:[%s1431_s22 + $0x118] sm:$0xff] %vm1045_vm0, %v905_v40  ;;  %v231_v39 = vld [vmem:[%s1420_s19 + $0x1c8] sm:$0xff] }
  0xae   : > { %1077 = vst [vmem:[%s1431_s22 + $0x100] sm:$0xff] %v902_v41  ;;  %1078 = vst.msk [vmem:[%s1431_s22 + $0x108] sm:$0xff] %vm1045_vm0, %v903_v42  ;;  %v533_v49 = vpop.permute.xlu1 %532  ;;  %v528_v50 = vpop.permute.xlu0 %527 }
  0xaf   : > { %v908_v51 = vmul.f32 %v533_v49, %v212_v43  ;;  %v909_v52 = vmul.f32 %v533_v49, %v213_v44  ;;  %v906_v53 = vmul.f32 %v528_v50, %v210_v45  ;;  %v907_v54 = vmul.f32 %v528_v50, %v211_v46  ;;  %842 = vperm.xlu1 %1313, %v429_v47   ;;  %v236_v46 = vld [vmem:[%s1420_s19 + $0x1f0] sm:$0xff]  ;;  %v237_v47 = vld [vmem:[%s1420_s19 + $0x1f8] sm:$0xff]  ;;  %v235_v49 = vld [vmem:[%s1420_s19 + $0x1e8] sm:$0xff] }
  0xb0   : > { %837 = vperm.xlu0 %1312, %v428_v48   ;;  %v234_v48 = vld [vmem:[%s1420_s19 + $0x1e0] sm:$0xff] }
  0xb1   : > { %1083 = vst [vmem:[%s1431_s22 + $0x130] sm:$0xff] %v908_v51  ;;  %1084 = vst.msk [vmem:[%s1431_s22 + $0x138] sm:$0xff] %vm1045_vm0, %v909_v52 }
  0xb2   : > { %1081 = vst [vmem:[%s1431_s22 + $0x120] sm:$0xff] %v906_v53  ;;  %1082 = vst.msk [vmem:[%s1431_s22 + $0x128] sm:$0xff] %vm1045_vm0, %v907_v54  ;;  %v543_v61 = vpop.permute.xlu1 %542  ;;  %v538_v62 = vpop.permute.xlu0 %537 }
  0xb3   : > { %v912_v63 = vmul.f32 %v543_v61, %v216_v55  ;;  %v913_v0 = vmul.f32 %v543_v61, %v217_v56  ;;  %v910_v1 = vmul.f32 %v538_v62, %v214_v57  ;;  %v911_v2 = vmul.f32 %v538_v62, %v215_v58  ;;  %852 = vperm.xlu1 %1313, %v431_v59   ;;  %v240_v56 = vld [vmem:[%s1420_s19 + $0x210] sm:$0xff]  ;;  %v241_v57 = vld [vmem:[%s1420_s19 + $0x218] sm:$0xff]  ;;  %v238_v58 = vld [vmem:[%s1420_s19 + $0x200] sm:$0xff] }
  0xb4   : > { %847 = vperm.xlu0 %1312, %v430_v60   ;;  %v239_v59 = vld [vmem:[%s1420_s19 + $0x208] sm:$0xff] }
  0xb5   : > { %1087 = vst [vmem:[%s1431_s22 + $0x150] sm:$0xff] %v912_v63  ;;  %1088 = vst.msk [vmem:[%s1431_s22 + $0x158] sm:$0xff] %vm1045_vm0, %v913_v0 }
  0xb6   : > { %1085 = vst [vmem:[%s1431_s22 + $0x140] sm:$0xff] %v910_v1  ;;  %1086 = vst.msk [vmem:[%s1431_s22 + $0x148] sm:$0xff] %vm1045_vm0, %v911_v2  ;;  %v553_v9 = vpop.permute.xlu1 %552  ;;  %v548_v10 = vpop.permute.xlu0 %547  ;;  %v244_v2 = vld [vmem:[%s1420_s19 + $0x230] sm:$0xff] }
  0xb7   : > { %v916_v11 = vmul.f32 %v553_v9, %v220_v3  ;;  %v917_v12 = vmul.f32 %v553_v9, %v221_v4  ;;  %v914_v13 = vmul.f32 %v548_v10, %v218_v5  ;;  %v915_v14 = vmul.f32 %v548_v10, %v219_v6  ;;  %862 = vperm.xlu1 %1313, %v433_v7   ;;  %v245_v3 = vld [vmem:[%s1420_s19 + $0x238] sm:$0xff]  ;;  %v242_v4 = vld [vmem:[%s1420_s19 + $0x220] sm:$0xff]  ;;  %v243_v5 = vld [vmem:[%s1420_s19 + $0x228] sm:$0xff] }
  0xb8   : > { %857 = vperm.xlu0 %1312, %v432_v8  }
  0xb9   : > { %1091 = vst [vmem:[%s1431_s22 + $0x170] sm:$0xff] %v916_v11  ;;  %1092 = vst.msk [vmem:[%s1431_s22 + $0x178] sm:$0xff] %vm1045_vm0, %v917_v12  ;;  %v248_v12 = vld [vmem:[%s1420_s19 + $0x250] sm:$0xff] }
  0xba   : > { %1089 = vst [vmem:[%s1431_s22 + $0x160] sm:$0xff] %v914_v13  ;;  %1090 = vst.msk [vmem:[%s1431_s22 + $0x168] sm:$0xff] %vm1045_vm0, %v915_v14  ;;  %v563_v20 = vpop.permute.xlu1 %562  ;;  %v558_v21 = vpop.permute.xlu0 %557  ;;  %v249_v13 = vld [vmem:[%s1420_s19 + $0x258] sm:$0xff]  ;;  %v246_v14 = vld [vmem:[%s1420_s19 + $0x240] sm:$0xff] }
  0xbb   : > { %v920_v22 = vmul.f32 %v563_v20, %v224_v15  ;;  %v921_v23 = vmul.f32 %v563_v20, %v225_v16  ;;  %v918_v24 = vmul.f32 %v558_v21, %v222_v17  ;;  %v919_v25 = vmul.f32 %v558_v21, %v223_v18  ;;  %v247_v15 = vld [vmem:[%s1420_s19 + $0x248] sm:$0xff] }
  0xbc   : > { %867 = vperm.xlu0 %1312, %v434_v19  }
  0xbd   : > { %1095 = vst [vmem:[%s1431_s22 + $0x190] sm:$0xff] %v920_v22  ;;  %1096 = vst.msk [vmem:[%s1431_s22 + $0x198] sm:$0xff] %vm1045_vm0, %v921_v23  ;;  %v252_v22 = vld [vmem:[%s1420_s19 + $0x270] sm:$0xff]  ;;  %v253_v23 = vld [vmem:[%s1420_s19 + $0x278] sm:$0xff] }
  0xbe   : > { %1093 = vst [vmem:[%s1431_s22 + $0x180] sm:$0xff] %v918_v24  ;;  %1094 = vst.msk [vmem:[%s1431_s22 + $0x188] sm:$0xff] %vm1045_vm0, %v919_v25  ;;  %v573_v30 = vpop.permute.xlu1 %572  ;;  %v568_v31 = vpop.permute.xlu0 %567  ;;  %v250_v24 = vld [vmem:[%s1420_s19 + $0x260] sm:$0xff]  ;;  %v251_v25 = vld [vmem:[%s1420_s19 + $0x268] sm:$0xff] }
  0xbf   : > { %v924_v32 = vmul.f32 %v573_v30, %v228_v26  ;;  %v925_v33 = vmul.f32 %v573_v30, %v229_v27  ;;  %v922_v34 = vmul.f32 %v568_v31, %v226_v28  ;;  %v923_v35 = vmul.f32 %v568_v31, %v227_v29 }
  0xc1   : > { %1099 = vst [vmem:[%s1431_s22 + $0x1b0] sm:$0xff] %v924_v32  ;;  %1100 = vst.msk [vmem:[%s1431_s22 + $0x1b8] sm:$0xff] %vm1045_vm0, %v925_v33  ;;  %v256_v32 = vld [vmem:[%s1420_s19 + $0x290] sm:$0xff]  ;;  %v257_v33 = vld [vmem:[%s1420_s19 + $0x298] sm:$0xff] }
  0xc2   : > { %1097 = vst [vmem:[%s1431_s22 + $0x1a0] sm:$0xff] %v922_v34  ;;  %1098 = vst.msk [vmem:[%s1431_s22 + $0x1a8] sm:$0xff] %vm1045_vm0, %v923_v35  ;;  %v583_v40 = vpop.permute.xlu1 %582  ;;  %v578_v41 = vpop.permute.xlu0 %577  ;;  %v254_v34 = vld [vmem:[%s1420_s19 + $0x280] sm:$0xff]  ;;  %v255_v35 = vld [vmem:[%s1420_s19 + $0x288] sm:$0xff] }
  0xc3   : > { %v928_v42 = vmul.f32 %v583_v40, %v232_v36  ;;  %v929_v43 = vmul.f32 %v583_v40, %v233_v37  ;;  %v926_v44 = vmul.f32 %v578_v41, %v230_v38  ;;  %v927_v45 = vmul.f32 %v578_v41, %v231_v39 }
  0xc5   : > { %1103 = vst [vmem:[%s1431_s22 + $0x1d0] sm:$0xff] %v928_v42  ;;  %1104 = vst.msk [vmem:[%s1431_s22 + $0x1d8] sm:$0xff] %vm1045_vm0, %v929_v43  ;;  %v260_v42 = vld [vmem:[%s1420_s19 + $0x2b0] sm:$0xff]  ;;  %v261_v43 = vld [vmem:[%s1420_s19 + $0x2b8] sm:$0xff] }
  0xc6   : > { %1101 = vst [vmem:[%s1431_s22 + $0x1c0] sm:$0xff] %v926_v44  ;;  %1102 = vst.msk [vmem:[%s1431_s22 + $0x1c8] sm:$0xff] %vm1045_vm0, %v927_v45  ;;  %v593_v50 = vpop.permute.xlu1 %592  ;;  %v588_v51 = vpop.permute.xlu0 %587  ;;  %v258_v44 = vld [vmem:[%s1420_s19 + $0x2a0] sm:$0xff]  ;;  %v259_v45 = vld [vmem:[%s1420_s19 + $0x2a8] sm:$0xff] }
  0xc7   : > { %v932_v52 = vmul.f32 %v593_v50, %v236_v46  ;;  %v933_v53 = vmul.f32 %v593_v50, %v237_v47  ;;  %v930_v54 = vmul.f32 %v588_v51, %v234_v48  ;;  %v931_v55 = vmul.f32 %v588_v51, %v235_v49 }
  0xc9   : > { %1107 = vst [vmem:[%s1431_s22 + $0x1f0] sm:$0xff] %v932_v52  ;;  %1108 = vst.msk [vmem:[%s1431_s22 + $0x1f8] sm:$0xff] %vm1045_vm0, %v933_v53  ;;  %v264_v52 = vld [vmem:[%s1420_s19 + $0x2d0] sm:$0xff]  ;;  %v265_v53 = vld [vmem:[%s1420_s19 + $0x2d8] sm:$0xff] }
  0xca   : > { %1105 = vst [vmem:[%s1431_s22 + $0x1e0] sm:$0xff] %v930_v54  ;;  %1106 = vst.msk [vmem:[%s1431_s22 + $0x1e8] sm:$0xff] %vm1045_vm0, %v931_v55  ;;  %v603_v60 = vpop.permute.xlu1 %602  ;;  %v598_v61 = vpop.permute.xlu0 %597  ;;  %v262_v54 = vld [vmem:[%s1420_s19 + $0x2c0] sm:$0xff]  ;;  %v263_v55 = vld [vmem:[%s1420_s19 + $0x2c8] sm:$0xff] }
  0xcb   : > { %v936_v62 = vmul.f32 %v603_v60, %v240_v56  ;;  %v937_v63 = vmul.f32 %v603_v60, %v241_v57  ;;  %v934_v0 = vmul.f32 %v598_v61, %v238_v58  ;;  %v935_v1 = vmul.f32 %v598_v61, %v239_v59 }
  0xcd   : > { %1111 = vst [vmem:[%s1431_s22 + $0x210] sm:$0xff] %v936_v62  ;;  %1112 = vst.msk [vmem:[%s1431_s22 + $0x218] sm:$0xff] %vm1045_vm0, %v937_v63  ;;  %v268_v62 = vld [vmem:[%s1420_s19 + $0x2f0] sm:$0xff]  ;;  %v269_v63 = vld [vmem:[%s1420_s19 + $0x2f8] sm:$0xff] }
  0xce   : > { %1109 = vst [vmem:[%s1431_s22 + $0x200] sm:$0xff] %v934_v0  ;;  %1110 = vst.msk [vmem:[%s1431_s22 + $0x208] sm:$0xff] %vm1045_vm0, %v935_v1  ;;  %v613_v6 = vpop.permute.xlu1 %612  ;;  %v608_v7 = vpop.permute.xlu0 %607  ;;  %v266_v0 = vld [vmem:[%s1420_s19 + $0x2e0] sm:$0xff]  ;;  %v267_v1 = vld [vmem:[%s1420_s19 + $0x2e8] sm:$0xff] }
  0xcf   : > { %v940_v8 = vmul.f32 %v613_v6, %v244_v2  ;;  %v941_v9 = vmul.f32 %v613_v6, %v245_v3  ;;  %v938_v10 = vmul.f32 %v608_v7, %v242_v4  ;;  %v939_v11 = vmul.f32 %v608_v7, %v243_v5 }
  0xd1   : > { %1115 = vst [vmem:[%s1431_s22 + $0x230] sm:$0xff] %v940_v8  ;;  %1116 = vst.msk [vmem:[%s1431_s22 + $0x238] sm:$0xff] %vm1045_vm0, %v941_v9  ;;  %v272_v8 = vld [vmem:[%s1420_s19 + $0x310] sm:$0xff]  ;;  %v273_v9 = vld [vmem:[%s1420_s19 + $0x318] sm:$0xff] }
  0xd2   : > { %1113 = vst [vmem:[%s1431_s22 + $0x220] sm:$0xff] %v938_v10  ;;  %1114 = vst.msk [vmem:[%s1431_s22 + $0x228] sm:$0xff] %vm1045_vm0, %v939_v11  ;;  %v623_v16 = vpop.permute.xlu1 %622  ;;  %v618_v17 = vpop.permute.xlu0 %617  ;;  %v270_v10 = vld [vmem:[%s1420_s19 + $0x300] sm:$0xff]  ;;  %v271_v11 = vld [vmem:[%s1420_s19 + $0x308] sm:$0xff] }
  0xd3   : > { %v944_v18 = vmul.f32 %v623_v16, %v248_v12  ;;  %v945_v19 = vmul.f32 %v623_v16, %v249_v13  ;;  %v942_v20 = vmul.f32 %v618_v17, %v246_v14  ;;  %v943_v21 = vmul.f32 %v618_v17, %v247_v15 }
  0xd5   : > { %1119 = vst [vmem:[%s1431_s22 + $0x250] sm:$0xff] %v944_v18  ;;  %1120 = vst.msk [vmem:[%s1431_s22 + $0x258] sm:$0xff] %vm1045_vm0, %v945_v19  ;;  %v276_v18 = vld [vmem:[%s1420_s19 + $0x330] sm:$0xff]  ;;  %v277_v19 = vld [vmem:[%s1420_s19 + $0x338] sm:$0xff] }
  0xd6   : > { %1117 = vst [vmem:[%s1431_s22 + $0x240] sm:$0xff] %v942_v20  ;;  %1118 = vst.msk [vmem:[%s1431_s22 + $0x248] sm:$0xff] %vm1045_vm0, %v943_v21  ;;  %v633_v26 = vpop.permute.xlu1 %632  ;;  %v628_v27 = vpop.permute.xlu0 %627  ;;  %v274_v20 = vld [vmem:[%s1420_s19 + $0x320] sm:$0xff]  ;;  %v275_v21 = vld [vmem:[%s1420_s19 + $0x328] sm:$0xff] }
  0xd7   : > { %v948_v28 = vmul.f32 %v633_v26, %v252_v22  ;;  %v949_v29 = vmul.f32 %v633_v26, %v253_v23  ;;  %v946_v30 = vmul.f32 %v628_v27, %v250_v24  ;;  %v947_v31 = vmul.f32 %v628_v27, %v251_v25 }
  0xd9   : > { %1123 = vst [vmem:[%s1431_s22 + $0x270] sm:$0xff] %v948_v28  ;;  %1124 = vst.msk [vmem:[%s1431_s22 + $0x278] sm:$0xff] %vm1045_vm0, %v949_v29  ;;  %v280_v28 = vld [vmem:[%s1420_s19 + $0x350] sm:$0xff]  ;;  %v281_v29 = vld [vmem:[%s1420_s19 + $0x358] sm:$0xff] }
  0xda   : > { %1121 = vst [vmem:[%s1431_s22 + $0x260] sm:$0xff] %v946_v30  ;;  %1122 = vst.msk [vmem:[%s1431_s22 + $0x268] sm:$0xff] %vm1045_vm0, %v947_v31  ;;  %v643_v36 = vpop.permute.xlu1 %642  ;;  %v638_v37 = vpop.permute.xlu0 %637  ;;  %v278_v30 = vld [vmem:[%s1420_s19 + $0x340] sm:$0xff]  ;;  %v279_v31 = vld [vmem:[%s1420_s19 + $0x348] sm:$0xff] }
  0xdb   : > { %v952_v38 = vmul.f32 %v643_v36, %v256_v32  ;;  %v953_v39 = vmul.f32 %v643_v36, %v257_v33  ;;  %v950_v40 = vmul.f32 %v638_v37, %v254_v34  ;;  %v951_v41 = vmul.f32 %v638_v37, %v255_v35 }
  0xdd   : > { %1127 = vst [vmem:[%s1431_s22 + $0x290] sm:$0xff] %v952_v38  ;;  %1128 = vst.msk [vmem:[%s1431_s22 + $0x298] sm:$0xff] %vm1045_vm0, %v953_v39  ;;  %v284_v38 = vld [vmem:[%s1420_s19 + $0x370] sm:$0xff]  ;;  %v285_v39 = vld [vmem:[%s1420_s19 + $0x378] sm:$0xff] }
  0xde   : > { %1125 = vst [vmem:[%s1431_s22 + $0x280] sm:$0xff] %v950_v40  ;;  %1126 = vst.msk [vmem:[%s1431_s22 + $0x288] sm:$0xff] %vm1045_vm0, %v951_v41  ;;  %v653_v46 = vpop.permute.xlu1 %652  ;;  %v648_v47 = vpop.permute.xlu0 %647  ;;  %v282_v40 = vld [vmem:[%s1420_s19 + $0x360] sm:$0xff]  ;;  %v283_v41 = vld [vmem:[%s1420_s19 + $0x368] sm:$0xff] }
  0xdf   : > { %v956_v48 = vmul.f32 %v653_v46, %v260_v42  ;;  %v957_v49 = vmul.f32 %v653_v46, %v261_v43  ;;  %v954_v50 = vmul.f32 %v648_v47, %v258_v44  ;;  %v955_v51 = vmul.f32 %v648_v47, %v259_v45 }
  0xe1   : > { %1131 = vst [vmem:[%s1431_s22 + $0x2b0] sm:$0xff] %v956_v48  ;;  %1132 = vst.msk [vmem:[%s1431_s22 + $0x2b8] sm:$0xff] %vm1045_vm0, %v957_v49  ;;  %v288_v48 = vld [vmem:[%s1420_s19 + $0x390] sm:$0xff]  ;;  %v289_v49 = vld [vmem:[%s1420_s19 + $0x398] sm:$0xff] }
  0xe2   : > { %1129 = vst [vmem:[%s1431_s22 + $0x2a0] sm:$0xff] %v954_v50  ;;  %1130 = vst.msk [vmem:[%s1431_s22 + $0x2a8] sm:$0xff] %vm1045_vm0, %v955_v51  ;;  %v663_v56 = vpop.permute.xlu1 %662  ;;  %v658_v57 = vpop.permute.xlu0 %657  ;;  %v286_v50 = vld [vmem:[%s1420_s19 + $0x380] sm:$0xff]  ;;  %v287_v51 = vld [vmem:[%s1420_s19 + $0x388] sm:$0xff] }
  0xe3   : > { %v960_v58 = vmul.f32 %v663_v56, %v264_v52  ;;  %v961_v59 = vmul.f32 %v663_v56, %v265_v53  ;;  %v958_v60 = vmul.f32 %v658_v57, %v262_v54  ;;  %v959_v61 = vmul.f32 %v658_v57, %v263_v55 }
  0xe5   : > { %1135 = vst [vmem:[%s1431_s22 + $0x2d0] sm:$0xff] %v960_v58  ;;  %1136 = vst.msk [vmem:[%s1431_s22 + $0x2d8] sm:$0xff] %vm1045_vm0, %v961_v59  ;;  %v292_v58 = vld [vmem:[%s1420_s19 + $0x3b0] sm:$0xff]  ;;  %v293_v59 = vld [vmem:[%s1420_s19 + $0x3b8] sm:$0xff] }
  0xe6   : > { %1133 = vst [vmem:[%s1431_s22 + $0x2c0] sm:$0xff] %v958_v60  ;;  %1134 = vst.msk [vmem:[%s1431_s22 + $0x2c8] sm:$0xff] %vm1045_vm0, %v959_v61  ;;  %v673_v2 = vpop.permute.xlu1 %672  ;;  %v668_v3 = vpop.permute.xlu0 %667  ;;  %v290_v60 = vld [vmem:[%s1420_s19 + $0x3a0] sm:$0xff]  ;;  %v291_v61 = vld [vmem:[%s1420_s19 + $0x3a8] sm:$0xff] }
  0xe7   : > { %v964_v4 = vmul.f32 %v673_v2, %v268_v62  ;;  %v965_v5 = vmul.f32 %v673_v2, %v269_v63  ;;  %v962_v6 = vmul.f32 %v668_v3, %v266_v0  ;;  %v963_v7 = vmul.f32 %v668_v3, %v267_v1 }
  0xe9   : > { %1139 = vst [vmem:[%s1431_s22 + $0x2f0] sm:$0xff] %v964_v4  ;;  %1140 = vst.msk [vmem:[%s1431_s22 + $0x2f8] sm:$0xff] %vm1045_vm0, %v965_v5  ;;  %v296_v4 = vld [vmem:[%s1420_s19 + $0x3d0] sm:$0xff]  ;;  %v297_v5 = vld [vmem:[%s1420_s19 + $0x3d8] sm:$0xff] }
  0xea   : > { %1137 = vst [vmem:[%s1431_s22 + $0x2e0] sm:$0xff] %v962_v6  ;;  %1138 = vst.msk [vmem:[%s1431_s22 + $0x2e8] sm:$0xff] %vm1045_vm0, %v963_v7  ;;  %v683_v12 = vpop.permute.xlu1 %682  ;;  %v678_v13 = vpop.permute.xlu0 %677  ;;  %v294_v6 = vld [vmem:[%s1420_s19 + $0x3c0] sm:$0xff]  ;;  %v295_v7 = vld [vmem:[%s1420_s19 + $0x3c8] sm:$0xff] }
  0xeb   : > { %v968_v14 = vmul.f32 %v683_v12, %v272_v8  ;;  %v969_v15 = vmul.f32 %v683_v12, %v273_v9  ;;  %v966_v16 = vmul.f32 %v678_v13, %v270_v10  ;;  %v967_v17 = vmul.f32 %v678_v13, %v271_v11 }
  0xed   : > { %1143 = vst [vmem:[%s1431_s22 + $0x310] sm:$0xff] %v968_v14  ;;  %1144 = vst.msk [vmem:[%s1431_s22 + $0x318] sm:$0xff] %vm1045_vm0, %v969_v15  ;;  %v300_v14 = vld [vmem:[%s1420_s19 + $0x3f0] sm:$0xff]  ;;  %v301_v15 = vld [vmem:[%s1420_s19 + $0x3f8] sm:$0xff] }
  0xee   : > { %1141 = vst [vmem:[%s1431_s22 + $0x300] sm:$0xff] %v966_v16  ;;  %1142 = vst.msk [vmem:[%s1431_s22 + $0x308] sm:$0xff] %vm1045_vm0, %v967_v17  ;;  %v693_v22 = vpop.permute.xlu1 %692  ;;  %v688_v23 = vpop.permute.xlu0 %687  ;;  %v298_v16 = vld [vmem:[%s1420_s19 + $0x3e0] sm:$0xff]  ;;  %v299_v17 = vld [vmem:[%s1420_s19 + $0x3e8] sm:$0xff] }
  0xef   : > { %v972_v24 = vmul.f32 %v693_v22, %v276_v18  ;;  %v973_v25 = vmul.f32 %v693_v22, %v277_v19  ;;  %v970_v26 = vmul.f32 %v688_v23, %v274_v20  ;;  %v971_v27 = vmul.f32 %v688_v23, %v275_v21 }
  0xf1   : > { %1147 = vst [vmem:[%s1431_s22 + $0x330] sm:$0xff] %v972_v24  ;;  %1148 = vst.msk [vmem:[%s1431_s22 + $0x338] sm:$0xff] %vm1045_vm0, %v973_v25  ;;  %v304_v24 = vld [vmem:[%s1420_s19 + $0x410] sm:$0xff]  ;;  %v305_v25 = vld [vmem:[%s1420_s19 + $0x418] sm:$0xff] }
  0xf2   : > { %1145 = vst [vmem:[%s1431_s22 + $0x320] sm:$0xff] %v970_v26  ;;  %1146 = vst.msk [vmem:[%s1431_s22 + $0x328] sm:$0xff] %vm1045_vm0, %v971_v27  ;;  %v703_v32 = vpop.permute.xlu1 %702  ;;  %v698_v33 = vpop.permute.xlu0 %697  ;;  %v302_v26 = vld [vmem:[%s1420_s19 + $0x400] sm:$0xff]  ;;  %v303_v27 = vld [vmem:[%s1420_s19 + $0x408] sm:$0xff] }
  0xf3   : > { %v976_v34 = vmul.f32 %v703_v32, %v280_v28  ;;  %v977_v35 = vmul.f32 %v703_v32, %v281_v29  ;;  %v974_v36 = vmul.f32 %v698_v33, %v278_v30  ;;  %v975_v37 = vmul.f32 %v698_v33, %v279_v31 }
  0xf5   : > { %1151 = vst [vmem:[%s1431_s22 + $0x350] sm:$0xff] %v976_v34  ;;  %1152 = vst.msk [vmem:[%s1431_s22 + $0x358] sm:$0xff] %vm1045_vm0, %v977_v35  ;;  %v308_v34 = vld [vmem:[%s1420_s19 + $0x430] sm:$0xff]  ;;  %v309_v35 = vld [vmem:[%s1420_s19 + $0x438] sm:$0xff] }
  0xf6   : > { %1149 = vst [vmem:[%s1431_s22 + $0x340] sm:$0xff] %v974_v36  ;;  %1150 = vst.msk [vmem:[%s1431_s22 + $0x348] sm:$0xff] %vm1045_vm0, %v975_v37  ;;  %v713_v42 = vpop.permute.xlu1 %712  ;;  %v708_v43 = vpop.permute.xlu0 %707  ;;  %v306_v36 = vld [vmem:[%s1420_s19 + $0x420] sm:$0xff]  ;;  %v307_v37 = vld [vmem:[%s1420_s19 + $0x428] sm:$0xff] }
  0xf7   : > { %v980_v44 = vmul.f32 %v713_v42, %v284_v38  ;;  %v981_v45 = vmul.f32 %v713_v42, %v285_v39  ;;  %v978_v46 = vmul.f32 %v708_v43, %v282_v40  ;;  %v979_v47 = vmul.f32 %v708_v43, %v283_v41 }
  0xf9   : > { %1155 = vst [vmem:[%s1431_s22 + $0x370] sm:$0xff] %v980_v44  ;;  %1156 = vst.msk [vmem:[%s1431_s22 + $0x378] sm:$0xff] %vm1045_vm0, %v981_v45  ;;  %v312_v44 = vld [vmem:[%s1420_s19 + $0x450] sm:$0xff]  ;;  %v313_v45 = vld [vmem:[%s1420_s19 + $0x458] sm:$0xff] }
  0xfa   : > { %1153 = vst [vmem:[%s1431_s22 + $0x360] sm:$0xff] %v978_v46  ;;  %1154 = vst.msk [vmem:[%s1431_s22 + $0x368] sm:$0xff] %vm1045_vm0, %v979_v47  ;;  %v723_v52 = vpop.permute.xlu1 %722  ;;  %v718_v53 = vpop.permute.xlu0 %717  ;;  %v310_v46 = vld [vmem:[%s1420_s19 + $0x440] sm:$0xff]  ;;  %v311_v47 = vld [vmem:[%s1420_s19 + $0x448] sm:$0xff] }
  0xfb   : > { %v984_v54 = vmul.f32 %v723_v52, %v288_v48  ;;  %v985_v55 = vmul.f32 %v723_v52, %v289_v49  ;;  %v982_v56 = vmul.f32 %v718_v53, %v286_v50  ;;  %v983_v57 = vmul.f32 %v718_v53, %v287_v51 }
  0xfd   : > { %1159 = vst [vmem:[%s1431_s22 + $0x390] sm:$0xff] %v984_v54  ;;  %1160 = vst.msk [vmem:[%s1431_s22 + $0x398] sm:$0xff] %vm1045_vm0, %v985_v55  ;;  %v316_v54 = vld [vmem:[%s1420_s19 + $0x470] sm:$0xff]  ;;  %v317_v55 = vld [vmem:[%s1420_s19 + $0x478] sm:$0xff] }
  0xfe   : > { %1157 = vst [vmem:[%s1431_s22 + $0x380] sm:$0xff] %v982_v56  ;;  %1158 = vst.msk [vmem:[%s1431_s22 + $0x388] sm:$0xff] %vm1045_vm0, %v983_v57  ;;  %v733_v62 = vpop.permute.xlu1 %732  ;;  %v728_v63 = vpop.permute.xlu0 %727  ;;  %v314_v56 = vld [vmem:[%s1420_s19 + $0x460] sm:$0xff]  ;;  %v315_v57 = vld [vmem:[%s1420_s19 + $0x468] sm:$0xff] }
  0xff   : > { %v988_v0 = vmul.f32 %v733_v62, %v292_v58  ;;  %v989_v1 = vmul.f32 %v733_v62, %v293_v59  ;;  %v986_v2 = vmul.f32 %v728_v63, %v290_v60  ;;  %v987_v3 = vmul.f32 %v728_v63, %v291_v61 }
 0x101   : > { %1163 = vst [vmem:[%s1431_s22 + $0x3b0] sm:$0xff] %v988_v0  ;;  %1164 = vst.msk [vmem:[%s1431_s22 + $0x3b8] sm:$0xff] %vm1045_vm0, %v989_v1  ;;  %v320_v0 = vld [vmem:[%s1420_s19 + $0x490] sm:$0xff]  ;;  %v321_v1 = vld [vmem:[%s1420_s19 + $0x498] sm:$0xff] }
 0x102   : > { %1161 = vst [vmem:[%s1431_s22 + $0x3a0] sm:$0xff] %v986_v2  ;;  %1162 = vst.msk [vmem:[%s1431_s22 + $0x3a8] sm:$0xff] %vm1045_vm0, %v987_v3  ;;  %v743_v8 = vpop.permute.xlu1 %742  ;;  %v738_v9 = vpop.permute.xlu0 %737  ;;  %v318_v2 = vld [vmem:[%s1420_s19 + $0x480] sm:$0xff]  ;;  %v319_v3 = vld [vmem:[%s1420_s19 + $0x488] sm:$0xff] }
 0x103   : > { %v992_v10 = vmul.f32 %v743_v8, %v296_v4  ;;  %v993_v11 = vmul.f32 %v743_v8, %v297_v5  ;;  %v990_v12 = vmul.f32 %v738_v9, %v294_v6  ;;  %v991_v13 = vmul.f32 %v738_v9, %v295_v7 }
 0x105   : > { %1167 = vst [vmem:[%s1431_s22 + $0x3d0] sm:$0xff] %v992_v10  ;;  %1168 = vst.msk [vmem:[%s1431_s22 + $0x3d8] sm:$0xff] %vm1045_vm0, %v993_v11  ;;  %v324_v10 = vld [vmem:[%s1420_s19 + $0x4b0] sm:$0xff]  ;;  %v325_v11 = vld [vmem:[%s1420_s19 + $0x4b8] sm:$0xff] }
 0x106   : > { %1165 = vst [vmem:[%s1431_s22 + $0x3c0] sm:$0xff] %v990_v12  ;;  %1166 = vst.msk [vmem:[%s1431_s22 + $0x3c8] sm:$0xff] %vm1045_vm0, %v991_v13  ;;  %v753_v18 = vpop.permute.xlu1 %752  ;;  %v322_v12 = vld [vmem:[%s1420_s19 + $0x4a0] sm:$0xff]  ;;  %v323_v13 = vld [vmem:[%s1420_s19 + $0x4a8] sm:$0xff] }
 0x107   : > { %v996_v19 = vmul.f32 %v753_v18, %v300_v14  ;;  %v997_v20 = vmul.f32 %v753_v18, %v301_v15  ;;  %v748_v21 = vpop.permute.xlu0 %747 }
 0x108   : > { %v994_v22 = vmul.f32 %v748_v21, %v298_v16  ;;  %v995_v23 = vmul.f32 %v748_v21, %v299_v17  ;;  %v329_v21 = vld [vmem:[%s1420_s19 + $0x4d8] sm:$0xff] }
 0x109   : > { %1171 = vst [vmem:[%s1431_s22 + $0x3f0] sm:$0xff] %v996_v19  ;;  %1172 = vst.msk [vmem:[%s1431_s22 + $0x3f8] sm:$0xff] %vm1045_vm0, %v997_v20  ;;  %v328_v20 = vld [vmem:[%s1420_s19 + $0x4d0] sm:$0xff] }
 0x10a   : > { %1169 = vst [vmem:[%s1431_s22 + $0x3e0] sm:$0xff] %v994_v22  ;;  %1170 = vst.msk [vmem:[%s1431_s22 + $0x3e8] sm:$0xff] %vm1045_vm0, %v995_v23  ;;  %v763_v28 = vpop.permute.xlu1 %762  ;;  %v326_v22 = vld [vmem:[%s1420_s19 + $0x4c0] sm:$0xff]  ;;  %v327_v23 = vld [vmem:[%s1420_s19 + $0x4c8] sm:$0xff] }
 0x10b   : > { %v1000_v29 = vmul.f32 %v763_v28, %v304_v24  ;;  %v1001_v30 = vmul.f32 %v763_v28, %v305_v25  ;;  %v758_v31 = vpop.permute.xlu0 %757 }
 0x10c   : > { %v998_v32 = vmul.f32 %v758_v31, %v302_v26  ;;  %v999_v33 = vmul.f32 %v758_v31, %v303_v27  ;;  %v333_v31 = vld [vmem:[%s1420_s19 + $0x4f8] sm:$0xff] }
 0x10d   : > { %1175 = vst [vmem:[%s1431_s22 + $0x410] sm:$0xff] %v1000_v29  ;;  %1176 = vst.msk [vmem:[%s1431_s22 + $0x418] sm:$0xff] %vm1045_vm0, %v1001_v30  ;;  %v332_v30 = vld [vmem:[%s1420_s19 + $0x4f0] sm:$0xff] }
 0x10e   : > { %1173 = vst [vmem:[%s1431_s22 + $0x400] sm:$0xff] %v998_v32  ;;  %1174 = vst.msk [vmem:[%s1431_s22 + $0x408] sm:$0xff] %vm1045_vm0, %v999_v33  ;;  %v773_v38 = vpop.permute.xlu1 %772  ;;  %v330_v32 = vld [vmem:[%s1420_s19 + $0x4e0] sm:$0xff]  ;;  %v331_v33 = vld [vmem:[%s1420_s19 + $0x4e8] sm:$0xff] }
 0x10f   : > { %v1004_v39 = vmul.f32 %v773_v38, %v308_v34  ;;  %v1005_v40 = vmul.f32 %v773_v38, %v309_v35  ;;  %v768_v41 = vpop.permute.xlu0 %767 }
 0x110   : > { %v1002_v42 = vmul.f32 %v768_v41, %v306_v36  ;;  %v1003_v43 = vmul.f32 %v768_v41, %v307_v37  ;;  %v337_v41 = vld [vmem:[%s1420_s19 + $0x518] sm:$0xff] }
 0x111   : > { %1179 = vst [vmem:[%s1431_s22 + $0x430] sm:$0xff] %v1004_v39  ;;  %1180 = vst.msk [vmem:[%s1431_s22 + $0x438] sm:$0xff] %vm1045_vm0, %v1005_v40  ;;  %v336_v40 = vld [vmem:[%s1420_s19 + $0x510] sm:$0xff] }
 0x112   : > { %1177 = vst [vmem:[%s1431_s22 + $0x420] sm:$0xff] %v1002_v42  ;;  %1178 = vst.msk [vmem:[%s1431_s22 + $0x428] sm:$0xff] %vm1045_vm0, %v1003_v43  ;;  %v783_v48 = vpop.permute.xlu1 %782  ;;  %v334_v42 = vld [vmem:[%s1420_s19 + $0x500] sm:$0xff]  ;;  %v335_v43 = vld [vmem:[%s1420_s19 + $0x508] sm:$0xff] }
 0x113   : > { %v1008_v49 = vmul.f32 %v783_v48, %v312_v44  ;;  %v1009_v50 = vmul.f32 %v783_v48, %v313_v45  ;;  %v778_v51 = vpop.permute.xlu0 %777 }
 0x114   : > { %v1006_v52 = vmul.f32 %v778_v51, %v310_v46  ;;  %v1007_v53 = vmul.f32 %v778_v51, %v311_v47  ;;  %v341_v51 = vld [vmem:[%s1420_s19 + $0x538] sm:$0xff] }
 0x115   : > { %1183 = vst [vmem:[%s1431_s22 + $0x450] sm:$0xff] %v1008_v49  ;;  %1184 = vst.msk [vmem:[%s1431_s22 + $0x458] sm:$0xff] %vm1045_vm0, %v1009_v50  ;;  %v340_v50 = vld [vmem:[%s1420_s19 + $0x530] sm:$0xff] }
 0x116   : > { %1181 = vst [vmem:[%s1431_s22 + $0x440] sm:$0xff] %v1006_v52  ;;  %1182 = vst.msk [vmem:[%s1431_s22 + $0x448] sm:$0xff] %vm1045_vm0, %v1007_v53  ;;  %v793_v58 = vpop.permute.xlu1 %792  ;;  %v338_v52 = vld [vmem:[%s1420_s19 + $0x520] sm:$0xff]  ;;  %v339_v53 = vld [vmem:[%s1420_s19 + $0x528] sm:$0xff] }
 0x117   : > { %v1012_v59 = vmul.f32 %v793_v58, %v316_v54  ;;  %v1013_v60 = vmul.f32 %v793_v58, %v317_v55  ;;  %v788_v61 = vpop.permute.xlu0 %787 }
 0x118   : > { %v1010_v62 = vmul.f32 %v788_v61, %v314_v56  ;;  %v1011_v63 = vmul.f32 %v788_v61, %v315_v57  ;;  %v345_v61 = vld [vmem:[%s1420_s19 + $0x558] sm:$0xff] }
 0x119   : > { %1187 = vst [vmem:[%s1431_s22 + $0x470] sm:$0xff] %v1012_v59  ;;  %1188 = vst.msk [vmem:[%s1431_s22 + $0x478] sm:$0xff] %vm1045_vm0, %v1013_v60  ;;  %v344_v60 = vld [vmem:[%s1420_s19 + $0x550] sm:$0xff] }
 0x11a   : > { %1185 = vst [vmem:[%s1431_s22 + $0x460] sm:$0xff] %v1010_v62  ;;  %1186 = vst.msk [vmem:[%s1431_s22 + $0x468] sm:$0xff] %vm1045_vm0, %v1011_v63  ;;  %v803_v4 = vpop.permute.xlu1 %802  ;;  %v342_v62 = vld [vmem:[%s1420_s19 + $0x540] sm:$0xff]  ;;  %v343_v63 = vld [vmem:[%s1420_s19 + $0x548] sm:$0xff] }
 0x11b   : > { %v1016_v5 = vmul.f32 %v803_v4, %v320_v0  ;;  %v1017_v6 = vmul.f32 %v803_v4, %v321_v1  ;;  %v798_v7 = vpop.permute.xlu0 %797 }
 0x11c   : > { %v1014_v8 = vmul.f32 %v798_v7, %v318_v2  ;;  %v1015_v9 = vmul.f32 %v798_v7, %v319_v3  ;;  %v347_v7 = vld [vmem:[%s1420_s19 + $0x568] sm:$0xff] }
 0x11d   : > { %1191 = vst [vmem:[%s1431_s22 + $0x490] sm:$0xff] %v1016_v5  ;;  %1192 = vst.msk [vmem:[%s1431_s22 + $0x498] sm:$0xff] %vm1045_vm0, %v1017_v6  ;;  %v346_v6 = vld [vmem:[%s1420_s19 + $0x560] sm:$0xff] }
 0x11e   : > { %1189 = vst [vmem:[%s1431_s22 + $0x480] sm:$0xff] %v1014_v8  ;;  %1190 = vst.msk [vmem:[%s1431_s22 + $0x488] sm:$0xff] %vm1045_vm0, %v1015_v9  ;;  %v813_v14 = vpop.permute.xlu1 %812 }
 0x11f   : > { %v1020_v15 = vmul.f32 %v813_v14, %v324_v10  ;;  %v1021_v16 = vmul.f32 %v813_v14, %v325_v11  ;;  %v808_v17 = vpop.permute.xlu0 %807 }
 0x120   : > { %v1018_v18 = vmul.f32 %v808_v17, %v322_v12  ;;  %v1019_v19 = vmul.f32 %v808_v17, %v323_v13 }
 0x121   : > { %1195 = vst [vmem:[%s1431_s22 + $0x4b0] sm:$0xff] %v1020_v15  ;;  %1196 = vst.msk [vmem:[%s1431_s22 + $0x4b8] sm:$0xff] %vm1045_vm0, %v1021_v16 }
 0x122   : > { %1193 = vst [vmem:[%s1431_s22 + $0x4a0] sm:$0xff] %v1018_v18  ;;  %1194 = vst.msk [vmem:[%s1431_s22 + $0x4a8] sm:$0xff] %vm1045_vm0, %v1019_v19  ;;  %v823_v24 = vpop.permute.xlu1 %822 }
 0x123   : > { %v1024_v25 = vmul.f32 %v823_v24, %v328_v20  ;;  %v1025_v26 = vmul.f32 %v823_v24, %v329_v21  ;;  %v818_v27 = vpop.permute.xlu0 %817 }
 0x124   : > { %v1022_v28 = vmul.f32 %v818_v27, %v326_v22  ;;  %v1023_v29 = vmul.f32 %v818_v27, %v327_v23 }
 0x125   : > { %1199 = vst [vmem:[%s1431_s22 + $0x4d0] sm:$0xff] %v1024_v25  ;;  %1200 = vst.msk [vmem:[%s1431_s22 + $0x4d8] sm:$0xff] %vm1045_vm0, %v1025_v26 }
 0x126   : > { %1197 = vst [vmem:[%s1431_s22 + $0x4c0] sm:$0xff] %v1022_v28  ;;  %1198 = vst.msk [vmem:[%s1431_s22 + $0x4c8] sm:$0xff] %vm1045_vm0, %v1023_v29  ;;  %v833_v34 = vpop.permute.xlu1 %832 }
 0x127   : > { %v1028_v35 = vmul.f32 %v833_v34, %v332_v30  ;;  %v1029_v36 = vmul.f32 %v833_v34, %v333_v31  ;;  %v828_v37 = vpop.permute.xlu0 %827 }
 0x128   : > { %v1026_v38 = vmul.f32 %v828_v37, %v330_v32  ;;  %v1027_v39 = vmul.f32 %v828_v37, %v331_v33 }
 0x129   : > { %1203 = vst [vmem:[%s1431_s22 + $0x4f0] sm:$0xff] %v1028_v35  ;;  %1204 = vst.msk [vmem:[%s1431_s22 + $0x4f8] sm:$0xff] %vm1045_vm0, %v1029_v36 }
 0x12a   : > { %1201 = vst [vmem:[%s1431_s22 + $0x4e0] sm:$0xff] %v1026_v38  ;;  %1202 = vst.msk [vmem:[%s1431_s22 + $0x4e8] sm:$0xff] %vm1045_vm0, %v1027_v39  ;;  %v843_v44 = vpop.permute.xlu1 %842 }
 0x12b   : > { %v1032_v45 = vmul.f32 %v843_v44, %v336_v40  ;;  %v1033_v46 = vmul.f32 %v843_v44, %v337_v41  ;;  %v838_v47 = vpop.permute.xlu0 %837 }
 0x12c   : > { %v1030_v48 = vmul.f32 %v838_v47, %v334_v42  ;;  %v1031_v49 = vmul.f32 %v838_v47, %v335_v43 }
 0x12d   : > { %1207 = vst [vmem:[%s1431_s22 + $0x510] sm:$0xff] %v1032_v45  ;;  %1208 = vst.msk [vmem:[%s1431_s22 + $0x518] sm:$0xff] %vm1045_vm0, %v1033_v46 }
 0x12e   : > { %1205 = vst [vmem:[%s1431_s22 + $0x500] sm:$0xff] %v1030_v48  ;;  %1206 = vst.msk [vmem:[%s1431_s22 + $0x508] sm:$0xff] %vm1045_vm0, %v1031_v49  ;;  %v853_v54 = vpop.permute.xlu1 %852 }
 0x12f   : > { %v1036_v55 = vmul.f32 %v853_v54, %v340_v50  ;;  %v1037_v56 = vmul.f32 %v853_v54, %v341_v51  ;;  %v848_v57 = vpop.permute.xlu0 %847 }
 0x130   : > { %v1034_v58 = vmul.f32 %v848_v57, %v338_v52  ;;  %v1035_v59 = vmul.f32 %v848_v57, %v339_v53 }
 0x131   : > { %1211 = vst [vmem:[%s1431_s22 + $0x530] sm:$0xff] %v1036_v55  ;;  %1212 = vst.msk [vmem:[%s1431_s22 + $0x538] sm:$0xff] %vm1045_vm0, %v1037_v56 }
 0x132   : > { %1209 = vst [vmem:[%s1431_s22 + $0x520] sm:$0xff] %v1034_v58  ;;  %1210 = vst.msk [vmem:[%s1431_s22 + $0x528] sm:$0xff] %vm1045_vm0, %v1035_v59  ;;  %v863_v0 = vpop.permute.xlu1 %862 }
 0x133   : > { %v1040_v1 = vmul.f32 %v863_v0, %v344_v60  ;;  %v1041_v2 = vmul.f32 %v863_v0, %v345_v61  ;;  %v858_v3 = vpop.permute.xlu0 %857 }
 0x134   : > { %v1038_v4 = vmul.f32 %v858_v3, %v342_v62  ;;  %v1039_v5 = vmul.f32 %v858_v3, %v343_v63 }
 0x135   : > { %1215 = vst [vmem:[%s1431_s22 + $0x550] sm:$0xff] %v1040_v1  ;;  %1216 = vst.msk [vmem:[%s1431_s22 + $0x558] sm:$0xff] %vm1045_vm0, %v1041_v2 }
 0x136   : > { %1213 = vst [vmem:[%s1431_s22 + $0x540] sm:$0xff] %v1038_v4  ;;  %1214 = vst.msk [vmem:[%s1431_s22 + $0x548] sm:$0xff] %vm1045_vm0, %v1039_v5 }
 0x137   : > { %v868_v8 = vpop.permute.xlu0 %867 }
 0x138   : > { %v1042_v9 = vmul.f32 %v868_v8, %v346_v6  ;;  %v1043_v10 = vmul.f32 %v868_v8, %v347_v7 }
 0x13a   : > { %1217 = vst [vmem:[%s1431_s22 + $0x560] sm:$0xff] %v1042_v9  ;;  %1218 = vst.msk [vmem:[%s1431_s22 + $0x568] sm:$0xff] %vm1045_vm0, %v1043_v10 }
 0x13b PF: > { %s12_s9 = sadd.s32 1, %s1320_s9  }
 0x13c   : > { %p9_p4 = scmp.ge.s32.totalorder %s12_s9, 4  }
 0x13e   :  { %11 = sbr.rel (!%p9_p4) target bundleno = 1 (0x1), region = 61 }

</bundles_post_ra>
